<compile_context>
chip_gen: v7x
topology: tpu7x:2x2x1
jax: 0.10.0
libtpu: 0.0.40
codegen_flags: <defaults>
</compile_context>

<pallas_src>
import functools

import jax
import jax.numpy as jnp
from jax.experimental import pallas as pl
from jax.experimental.pallas import tpu as pltpu

_EPS = 1e-5


def _round_up(x, m):
    return (x + m - 1) // m * m


# ---------------------------------------------------------------------------
# Fused kernel: the entire chain of residual blocks in one invocation.
# Statically unrolled over blocks (has_shortcut is a Python tuple of bools).
# ---------------------------------------------------------------------------
def _fused_chain_kernel(has_shortcut, x_ref, *refs):
    out_ref = refs[-1]
    w = refs[:-1]

    x = x_ref[...]                      # f32, zero-padded lanes stay zero
    idx = 0
    for sc in has_shortcut:
        xb = x.astype(jnp.bfloat16)     # bf16 MXU operands, f32 accumulate
        w1 = w[idx][...]
        b1 = w[idx + 1][...]
        w2 = w[idx + 2][...]
        b2 = w[idx + 3][...]
        idx += 4

        h = jnp.dot(xb, w1, preferred_element_type=jnp.float32) + b1
        h = jnp.maximum(h, 0.0)
        y = jnp.dot(h.astype(jnp.bfloat16), w2,
                    preferred_element_type=jnp.float32) + b2

        if sc:
            ws = w[idx][...]
            bs = w[idx + 1][...]
            idx += 2
            r = jnp.dot(xb, ws, preferred_element_type=jnp.float32) + bs
        else:
            r = x
        x = y + r                        # activation stays resident in VMEM

    out_ref[...] = x


# ---------------------------------------------------------------------------
# One-time parameter preparation: fold eval-mode BN into the preceding Linear,
# zero-pad feature dims to multiples of 128, pre-cast weights to bf16.
# ---------------------------------------------------------------------------
def _fold_bn(w, b, gamma, beta, mean, var):
    scale = gamma / jnp.sqrt(var + _EPS)
    return w * scale[None, :], (b - mean) * scale + beta


def _pad_w(w, rows, cols):
    return jnp.zeros((rows, cols), w.dtype).at[:w.shape[0], :w.shape[1]].set(w)


def _pad_b(b, cols):
    return jnp.zeros((1, cols), b.dtype).at[0, :b.shape[0]].set(b)


def prepare_params(params_list):
    prepared = []
    for p in params_list:
        d_in, d_out = p["w1"].shape
        dp_in, dp_out = _round_up(d_in, 128), _round_up(d_out, 128)

        w1, b1 = _fold_bn(p["w1"], p["b1"], p["bn1_gamma"], p["bn1_beta"],
                          p["bn1_mean"], p["bn1_var"])
        w2, b2 = _fold_bn(p["w2"], p["b2"], p["bn2_gamma"], p["bn2_beta"],
                          p["bn2_mean"], p["bn2_var"])

        e = {
            "w1": _pad_w(w1, dp_in, dp_out).astype(jnp.bfloat16),
            "b1": _pad_b(b1, dp_out).astype(jnp.float32),
            "w2": _pad_w(w2, dp_out, dp_out).astype(jnp.bfloat16),
            "b2": _pad_b(b2, dp_out).astype(jnp.float32),
            "has_shortcut": p.get("ws") is not None,
            "d_in": d_in, "d_out": d_out,
            "dp_in": dp_in, "dp_out": dp_out,
        }
        if e["has_shortcut"]:
            e["ws"] = _pad_w(p["ws"], dp_in, dp_out).astype(jnp.bfloat16)
            e["bs"] = _pad_b(p["bs"], dp_out).astype(jnp.float32)
        prepared.append(e)
    return prepared


# ---------------------------------------------------------------------------
# Forward: single fused pallas_call over the whole block chain.
# ---------------------------------------------------------------------------
def residual_layer_block_forward(x, prepared):
    n, d_in = x.shape
    assert d_in == prepared[0]["d_in"]
    dp_in0 = prepared[0]["dp_in"]
    d_out_f = prepared[-1]["d_out"]
    dp_out_f = prepared[-1]["dp_out"]

    # Batch tiling: single tile for small batches, 256-row tiles for large
    # ones (parallel grid axis -> both TCs on v7x).
    tn = 256 if n > 256 else _round_up(max(n, 1), 8)
    n_pad = _round_up(n, tn)

    # Lane-dense zero-padded activation slab (padded lanes stay zero through
    # the chain because padded weight cols / biases are zero).
    xp = jnp.zeros((n_pad, dp_in0), jnp.float32).at[:n, :d_in].set(x)

    inputs = [xp]
    in_specs = [pl.BlockSpec((tn, dp_in0), lambda i: (i, 0))]
    has_shortcut = []
    for e in prepared:
        has_shortcut.append(e["has_shortcut"])
        names = ["w1", "b1", "w2", "b2"]
        if e["has_shortcut"]:
            names += ["ws", "bs"]
        for nm in names:
            a = e[nm]
            inputs.append(a)
            # Constant block index -> weights/biases are DMA'd only once.
            in_specs.append(pl.BlockSpec(a.shape, lambda i: (0, 0)))

    out_spec = pl.BlockSpec((tn, dp_out_f), lambda i: (i, 0))
    kernel = functools.partial(_fused_chain_kernel, tuple(has_shortcut))

    out = pl.pallas_call(
        kernel,
        out_shape=jax.ShapeDtypeStruct((n_pad, dp_out_f), jnp.float32),
        grid_spec=pl.GridSpec(
            grid=(n_pad // tn,),
            in_specs=in_specs,
            out_specs=out_spec,
        ),
        compiler_params=pltpu.CompilerParams(
            dimension_semantics=("parallel",)),
    )(*inputs)

    return out[:n, :d_out_f]


# ---------------------------------------------------------------------------
# Deterministic parameter init (shapes match the PyTorch module __init__)
# ---------------------------------------------------------------------------
def init_residual_block(key, d_in, d_out):
    ks = jax.random.split(key, 12)
    u = lambda k, shape, lim: jax.random.uniform(k, shape, jnp.float32, -lim, lim)
    p = {
        # FeedForwardLayer: Linear(d_in, d_out) + BatchNorm1d(d_out)
        "w1": u(ks[0], (d_in, d_out), 1.0 / jnp.sqrt(d_in)),
        "b1": u(ks[1], (d_out,), 1.0 / jnp.sqrt(d_in)),
        "bn1_gamma": 1.0 + 0.1 * jax.random.normal(ks[2], (d_out,), jnp.float32),
        "bn1_beta": 0.1 * jax.random.normal(ks[3], (d_out,), jnp.float32),
        "bn1_mean": 0.1 * jax.random.normal(ks[4], (d_out,), jnp.float32),
        "bn1_var": jax.random.uniform(ks[5], (d_out,), jnp.float32, 0.5, 1.5),
        # Linear(d_out, d_out) + BatchNorm1d(d_out)
        "w2": u(ks[6], (d_out, d_out), 1.0 / jnp.sqrt(d_out)),
        "b2": u(ks[7], (d_out,), 1.0 / jnp.sqrt(d_out)),
        "bn2_gamma": 1.0 + 0.1 * jax.random.normal(ks[8], (d_out,), jnp.float32),
        "bn2_beta": 0.1 * jax.random.normal(ks[9], (d_out,), jnp.float32),
        "bn2_mean": 0.1 * jax.random.normal(ks[10], (d_out,), jnp.float32),
        "bn2_var": jax.random.uniform(ks[11], (d_out,), jnp.float32, 0.5, 1.5),
        "ws": None,
        "bs": None,
    }
    if d_in != d_out:
        k_a, k_b = jax.random.split(jax.random.fold_in(key, 99))
        p["ws"] = u(k_a, (d_in, d_out), 1.0 / jnp.sqrt(d_in))
        p["bs"] = u(k_b, (d_out,), 1.0 / jnp.sqrt(d_in))
    return p


def init_residual_layer_block(key, layer_dims):
    params = []
    d_in = layer_dims[0]
    for i, d_out in enumerate(layer_dims):
        params.append(init_residual_block(jax.random.fold_in(key, i), d_in, d_out))
        d_in = d_out
    return params


# ---------------------------------------------------------------------------
# Pure-JAX reference (eval-mode PyTorch semantics) for correctness check
# ---------------------------------------------------------------------------
def _ref_block(x, p):
    h = x @ p["w1"] + p["b1"]
    h = (h - p["bn1_mean"]) / jnp.sqrt(p["bn1_var"] + _EPS) * p["bn1_gamma"] + p["bn1_beta"]
    h = jnp.maximum(h, 0.0)
    y = h @ p["w2"] + p["b2"]
    y = (y - p["bn2_mean"]) / jnp.sqrt(p["bn2_var"] + _EPS) * p["bn2_gamma"] + p["bn2_beta"]
    res = x @ p["ws"] + p["bs"] if p.get("ws") is not None else x
    return y + res


def _ref_model(x, params_list):
    for p in params_list:
        x = _ref_block(x, p)
    return x


if __name__ == "__main__":
    layer_dims = [32, 32, 64]   # last block exercises the shortcut path
    batch = 8

    key = jax.random.PRNGKey(0)
    k_x, k_p = jax.random.split(key)
    x = jax.random.normal(k_x, (batch, layer_dims[0]), jnp.float32)
    params = init_residual_layer_block(k_p, layer_dims)

    prepared = prepare_params(params)           # BN fold + pad + bf16, once
    out = residual_layer_block_forward(x, prepared)
    out = jax.block_until_ready(out)

    ref = _ref_model(x, params)
    assert out.shape == (batch, layer_dims[-1])
    # bf16 MXU operands (f32 accumulate) -> slightly looser tolerance than f32.
    assert jnp.allclose(out, ref, rtol=5e-2, atol=5e-2)

    print("KERNEL_OK")
</pallas_src>

<mosaic_0001>
module attributes {stable_mosaic.version = 11 : i64} {
  func.func @_fused_chain_kernel(%arg0: i32, %arg1: memref<8x128xf32, #tpu.memory_space<vmem>>, %arg2: memref<128x128xbf16, #tpu.memory_space<vmem>>, %arg3: memref<1x128xf32, #tpu.memory_space<vmem>>, %arg4: memref<128x128xbf16, #tpu.memory_space<vmem>>, %arg5: memref<1x128xf32, #tpu.memory_space<vmem>>, %arg6: memref<128x128xbf16, #tpu.memory_space<vmem>>, %arg7: memref<1x128xf32, #tpu.memory_space<vmem>>, %arg8: memref<128x128xbf16, #tpu.memory_space<vmem>>, %arg9: memref<1x128xf32, #tpu.memory_space<vmem>>, %arg10: memref<128x128xbf16, #tpu.memory_space<vmem>>, %arg11: memref<1x128xf32, #tpu.memory_space<vmem>>, %arg12: memref<128x128xbf16, #tpu.memory_space<vmem>>, %arg13: memref<1x128xf32, #tpu.memory_space<vmem>>, %arg14: memref<128x128xbf16, #tpu.memory_space<vmem>>, %arg15: memref<1x128xf32, #tpu.memory_space<vmem>>, %arg16: memref<8x128xf32, #tpu.memory_space<vmem>>) attributes {dimension_semantics = [#tpu.dimension_semantics<parallel>], iteration_bounds = array<i64: 1>, scalar_prefetch = 0 : i64, scratch_operands = 0 : i64, tpu.core_type = #tpu.core_type<tc>, window_params = [{transform_indices = @transform_0, window_bounds = array<i64: 8, 128>}, {pipeline_mode = #tpu.pipeline_mode<synchronous>, transform_indices = @transform_1, window_bounds = array<i64: 128, 128>}, {pipeline_mode = #tpu.pipeline_mode<synchronous>, transform_indices = @transform_2, window_bounds = array<i64: 1, 128>}, {pipeline_mode = #tpu.pipeline_mode<synchronous>, transform_indices = @transform_3, window_bounds = array<i64: 128, 128>}, {pipeline_mode = #tpu.pipeline_mode<synchronous>, transform_indices = @transform_4, window_bounds = array<i64: 1, 128>}, {pipeline_mode = #tpu.pipeline_mode<synchronous>, transform_indices = @transform_5, window_bounds = array<i64: 128, 128>}, {pipeline_mode = #tpu.pipeline_mode<synchronous>, transform_indices = @transform_6, window_bounds = array<i64: 1, 128>}, {pipeline_mode = #tpu.pipeline_mode<synchronous>, transform_indices = @transform_7, window_bounds = array<i64: 128, 128>}, {pipeline_mode = #tpu.pipeline_mode<synchronous>, transform_indices = @transform_8, window_bounds = array<i64: 1, 128>}, {pipeline_mode = #tpu.pipeline_mode<synchronous>, transform_indices = @transform_9, window_bounds = array<i64: 128, 128>}, {pipeline_mode = #tpu.pipeline_mode<synchronous>, transform_indices = @transform_10, window_bounds = array<i64: 1, 128>}, {pipeline_mode = #tpu.pipeline_mode<synchronous>, transform_indices = @transform_11, window_bounds = array<i64: 128, 128>}, {pipeline_mode = #tpu.pipeline_mode<synchronous>, transform_indices = @transform_12, window_bounds = array<i64: 1, 128>}, {pipeline_mode = #tpu.pipeline_mode<synchronous>, transform_indices = @transform_13, window_bounds = array<i64: 128, 128>}, {pipeline_mode = #tpu.pipeline_mode<synchronous>, transform_indices = @transform_14, window_bounds = array<i64: 1, 128>}, {transform_indices = @transform_15, window_bounds = array<i64: 8, 128>}]} {
    %c0 = arith.constant 0 : index
    %c0_0 = arith.constant 0 : index
    %0 = vector.load %arg1[%c0, %c0_0] : memref<8x128xf32, #tpu.memory_space<vmem>>, vector<8x128xf32>
    %1 = arith.truncf %0 : vector<8x128xf32> to vector<8x128xbf16>
    %c0_1 = arith.constant 0 : index
    %c0_2 = arith.constant 0 : index
    %2 = vector.load %arg2[%c0_1, %c0_2] : memref<128x128xbf16, #tpu.memory_space<vmem>>, vector<128x128xbf16>
    %c0_3 = arith.constant 0 : index
    %c0_4 = arith.constant 0 : index
    %3 = vector.load %arg3[%c0_3, %c0_4] : memref<1x128xf32, #tpu.memory_space<vmem>>, vector<1x128xf32>
    %c0_5 = arith.constant 0 : index
    %c0_6 = arith.constant 0 : index
    %4 = vector.load %arg4[%c0_5, %c0_6] : memref<128x128xbf16, #tpu.memory_space<vmem>>, vector<128x128xbf16>
    %c0_7 = arith.constant 0 : index
    %c0_8 = arith.constant 0 : index
    %5 = vector.load %arg5[%c0_7, %c0_8] : memref<1x128xf32, #tpu.memory_space<vmem>>, vector<1x128xf32>
    %cst = arith.constant dense<0.000000e+00> : vector<8x128xf32>
    %6 = tpu.matmul %1, %2, %cst {dimension_numbers = #tpu.dot_dimension_numbers<[1], [0], [0], [1], [0, 0, 1, 1], [], []>} : vector<8x128xbf16>, vector<128x128xbf16>, vector<8x128xf32> -> vector<8x128xf32>
    %7 = vector.broadcast %3 : vector<1x128xf32> to vector<8x128xf32>
    %8 = arith.addf %6, %7 : vector<8x128xf32>
    %cst_9 = arith.constant 0.000000e+00 : f32
    %9 = vector.broadcast %cst_9 : f32 to vector<8x128xf32>
    %10 = arith.maximumf %8, %9 : vector<8x128xf32>
    %11 = arith.truncf %10 : vector<8x128xf32> to vector<8x128xbf16>
    %cst_10 = arith.constant dense<0.000000e+00> : vector<8x128xf32>
    %12 = tpu.matmul %11, %4, %cst_10 {dimension_numbers = #tpu.dot_dimension_numbers<[1], [0], [0], [1], [0, 0, 1, 1], [], []>} : vector<8x128xbf16>, vector<128x128xbf16>, vector<8x128xf32> -> vector<8x128xf32>
    %13 = vector.broadcast %5 : vector<1x128xf32> to vector<8x128xf32>
    %14 = arith.addf %12, %13 : vector<8x128xf32>
    %15 = arith.addf %14, %0 : vector<8x128xf32>
    %16 = arith.truncf %15 : vector<8x128xf32> to vector<8x128xbf16>
    %c0_11 = arith.constant 0 : index
    %c0_12 = arith.constant 0 : index
    %17 = vector.load %arg6[%c0_11, %c0_12] : memref<128x128xbf16, #tpu.memory_space<vmem>>, vector<128x128xbf16>
    %c0_13 = arith.constant 0 : index
    %c0_14 = arith.constant 0 : index
    %18 = vector.load %arg7[%c0_13, %c0_14] : memref<1x128xf32, #tpu.memory_space<vmem>>, vector<1x128xf32>
    %c0_15 = arith.constant 0 : index
    %c0_16 = arith.constant 0 : index
    %19 = vector.load %arg8[%c0_15, %c0_16] : memref<128x128xbf16, #tpu.memory_space<vmem>>, vector<128x128xbf16>
    %c0_17 = arith.constant 0 : index
    %c0_18 = arith.constant 0 : index
    %20 = vector.load %arg9[%c0_17, %c0_18] : memref<1x128xf32, #tpu.memory_space<vmem>>, vector<1x128xf32>
    %cst_19 = arith.constant dense<0.000000e+00> : vector<8x128xf32>
    %21 = tpu.matmul %16, %17, %cst_19 {dimension_numbers = #tpu.dot_dimension_numbers<[1], [0], [0], [1], [0, 0, 1, 1], [], []>} : vector<8x128xbf16>, vector<128x128xbf16>, vector<8x128xf32> -> vector<8x128xf32>
    %22 = vector.broadcast %18 : vector<1x128xf32> to vector<8x128xf32>
    %23 = arith.addf %21, %22 : vector<8x128xf32>
    %cst_20 = arith.constant 0.000000e+00 : f32
    %24 = vector.broadcast %cst_20 : f32 to vector<8x128xf32>
    %25 = arith.maximumf %23, %24 : vector<8x128xf32>
    %26 = arith.truncf %25 : vector<8x128xf32> to vector<8x128xbf16>
    %cst_21 = arith.constant dense<0.000000e+00> : vector<8x128xf32>
    %27 = tpu.matmul %26, %19, %cst_21 {dimension_numbers = #tpu.dot_dimension_numbers<[1], [0], [0], [1], [0, 0, 1, 1], [], []>} : vector<8x128xbf16>, vector<128x128xbf16>, vector<8x128xf32> -> vector<8x128xf32>
    %28 = vector.broadcast %20 : vector<1x128xf32> to vector<8x128xf32>
    %29 = arith.addf %27, %28 : vector<8x128xf32>
    %30 = arith.addf %29, %15 : vector<8x128xf32>
    %31 = arith.truncf %30 : vector<8x128xf32> to vector<8x128xbf16>
    %c0_22 = arith.constant 0 : index
    %c0_23 = arith.constant 0 : index
    %32 = vector.load %arg10[%c0_22, %c0_23] : memref<128x128xbf16, #tpu.memory_space<vmem>>, vector<128x128xbf16>
    %c0_24 = arith.constant 0 : index
    %c0_25 = arith.constant 0 : index
    %33 = vector.load %arg11[%c0_24, %c0_25] : memref<1x128xf32, #tpu.memory_space<vmem>>, vector<1x128xf32>
    %c0_26 = arith.constant 0 : index
    %c0_27 = arith.constant 0 : index
    %34 = vector.load %arg12[%c0_26, %c0_27] : memref<128x128xbf16, #tpu.memory_space<vmem>>, vector<128x128xbf16>
    %c0_28 = arith.constant 0 : index
    %c0_29 = arith.constant 0 : index
    %35 = vector.load %arg13[%c0_28, %c0_29] : memref<1x128xf32, #tpu.memory_space<vmem>>, vector<1x128xf32>
    %cst_30 = arith.constant dense<0.000000e+00> : vector<8x128xf32>
    %36 = tpu.matmul %31, %32, %cst_30 {dimension_numbers = #tpu.dot_dimension_numbers<[1], [0], [0], [1], [0, 0, 1, 1], [], []>} : vector<8x128xbf16>, vector<128x128xbf16>, vector<8x128xf32> -> vector<8x128xf32>
    %37 = vector.broadcast %33 : vector<1x128xf32> to vector<8x128xf32>
    %38 = arith.addf %36, %37 : vector<8x128xf32>
    %cst_31 = arith.constant 0.000000e+00 : f32
    %39 = vector.broadcast %cst_31 : f32 to vector<8x128xf32>
    %40 = arith.maximumf %38, %39 : vector<8x128xf32>
    %41 = arith.truncf %40 : vector<8x128xf32> to vector<8x128xbf16>
    %cst_32 = arith.constant dense<0.000000e+00> : vector<8x128xf32>
    %42 = tpu.matmul %41, %34, %cst_32 {dimension_numbers = #tpu.dot_dimension_numbers<[1], [0], [0], [1], [0, 0, 1, 1], [], []>} : vector<8x128xbf16>, vector<128x128xbf16>, vector<8x128xf32> -> vector<8x128xf32>
    %43 = vector.broadcast %35 : vector<1x128xf32> to vector<8x128xf32>
    %44 = arith.addf %42, %43 : vector<8x128xf32>
    %c0_33 = arith.constant 0 : index
    %c0_34 = arith.constant 0 : index
    %45 = vector.load %arg14[%c0_33, %c0_34] : memref<128x128xbf16, #tpu.memory_space<vmem>>, vector<128x128xbf16>
    %c0_35 = arith.constant 0 : index
    %c0_36 = arith.constant 0 : index
    %46 = vector.load %arg15[%c0_35, %c0_36] : memref<1x128xf32, #tpu.memory_space<vmem>>, vector<1x128xf32>
    %cst_37 = arith.constant dense<0.000000e+00> : vector<8x128xf32>
    %47 = tpu.matmul %31, %45, %cst_37 {dimension_numbers = #tpu.dot_dimension_numbers<[1], [0], [0], [1], [0, 0, 1, 1], [], []>} : vector<8x128xbf16>, vector<128x128xbf16>, vector<8x128xf32> -> vector<8x128xf32>
    %48 = vector.broadcast %46 : vector<1x128xf32> to vector<8x128xf32>
    %49 = arith.addf %47, %48 : vector<8x128xf32>
    %50 = arith.addf %44, %49 : vector<8x128xf32>
    %c0_38 = arith.constant 0 : index
    %c0_39 = arith.constant 0 : index
    %51 = vector.load %arg16[%c0_38, %c0_39] : memref<8x128xf32, #tpu.memory_space<vmem>>, vector<8x128xf32>
    tpu.vector_store %arg16[%c0_38, %c0_39], %50 {strides = array<i32>} : memref<8x128xf32, #tpu.memory_space<vmem>>, vector<8x128xf32>,
    return
  }
  func.func @transform_0(%arg0: i32) -> (i32, i32) {
    %c0_i32 = arith.constant 0 : i32
    %c0_i32_0 = arith.constant 0 : i32
    return %arg0, %c0_i32 : i32, i32
  }
  func.func @transform_1(%arg0: i32) -> (i32, i32) {
    %c0_i32 = arith.constant 0 : i32
    %c0_i32_0 = arith.constant 0 : i32
    %c0_i32_1 = arith.constant 0 : i32
    return %c0_i32, %c0_i32_0 : i32, i32
  }
  func.func @transform_2(%arg0: i32) -> (i32, i32) {
    %c0_i32 = arith.constant 0 : i32
    %c0_i32_0 = arith.constant 0 : i32
    %c0_i32_1 = arith.constant 0 : i32
    return %c0_i32, %c0_i32_0 : i32, i32
  }
  func.func @transform_3(%arg0: i32) -> (i32, i32) {
    %c0_i32 = arith.constant 0 : i32
    %c0_i32_0 = arith.constant 0 : i32
    %c0_i32_1 = arith.constant 0 : i32
    return %c0_i32, %c0_i32_0 : i32, i32
  }
  func.func @transform_4(%arg0: i32) -> (i32, i32) {
    %c0_i32 = arith.constant 0 : i32
    %c0_i32_0 = arith.constant 0 : i32
    %c0_i32_1 = arith.constant 0 : i32
    return %c0_i32, %c0_i32_0 : i32, i32
  }
  func.func @transform_5(%arg0: i32) -> (i32, i32) {
    %c0_i32 = arith.constant 0 : i32
    %c0_i32_0 = arith.constant 0 : i32
    %c0_i32_1 = arith.constant 0 : i32
    return %c0_i32, %c0_i32_0 : i32, i32
  }
  func.func @transform_6(%arg0: i32) -> (i32, i32) {
    %c0_i32 = arith.constant 0 : i32
    %c0_i32_0 = arith.constant 0 : i32
    %c0_i32_1 = arith.constant 0 : i32
    return %c0_i32, %c0_i32_0 : i32, i32
  }
  func.func @transform_7(%arg0: i32) -> (i32, i32) {
    %c0_i32 = arith.constant 0 : i32
    %c0_i32_0 = arith.constant 0 : i32
    %c0_i32_1 = arith.constant 0 : i32
    return %c0_i32, %c0_i32_0 : i32, i32
  }
  func.func @transform_8(%arg0: i32) -> (i32, i32) {
    %c0_i32 = arith.constant 0 : i32
    %c0_i32_0 = arith.constant 0 : i32
    %c0_i32_1 = arith.constant 0 : i32
    return %c0_i32, %c0_i32_0 : i32, i32
  }
  func.func @transform_9(%arg0: i32) -> (i32, i32) {
    %c0_i32 = arith.constant 0 : i32
    %c0_i32_0 = arith.constant 0 : i32
    %c0_i32_1 = arith.constant 0 : i32
    return %c0_i32, %c0_i32_0 : i32, i32
  }
  func.func @transform_10(%arg0: i32) -> (i32, i32) {
    %c0_i32 = arith.constant 0 : i32
    %c0_i32_0 = arith.constant 0 : i32
    %c0_i32_1 = arith.constant 0 : i32
    return %c0_i32, %c0_i32_0 : i32, i32
  }
  func.func @transform_11(%arg0: i32) -> (i32, i32) {
    %c0_i32 = arith.constant 0 : i32
    %c0_i32_0 = arith.constant 0 : i32
    %c0_i32_1 = arith.constant 0 : i32
    return %c0_i32, %c0_i32_0 : i32, i32
  }
  func.func @transform_12(%arg0: i32) -> (i32, i32) {
    %c0_i32 = arith.constant 0 : i32
    %c0_i32_0 = arith.constant 0 : i32
    %c0_i32_1 = arith.constant 0 : i32
    return %c0_i32, %c0_i32_0 : i32, i32
  }
  func.func @transform_13(%arg0: i32) -> (i32, i32) {
    %c0_i32 = arith.constant 0 : i32
    %c0_i32_0 = arith.constant 0 : i32
    %c0_i32_1 = arith.constant 0 : i32
    return %c0_i32, %c0_i32_0 : i32, i32
  }
  func.func @transform_14(%arg0: i32) -> (i32, i32) {
    %c0_i32 = arith.constant 0 : i32
    %c0_i32_0 = arith.constant 0 : i32
    %c0_i32_1 = arith.constant 0 : i32
    return %c0_i32, %c0_i32_0 : i32, i32
  }
  func.func @transform_15(%arg0: i32) -> (i32, i32) {
    %c0_i32 = arith.constant 0 : i32
    %c0_i32_0 = arith.constant 0 : i32
    return %arg0, %c0_i32 : i32, i32
  }
}

</mosaic_0001>

<bundles_post_ra>
// kernel: tpu_custom_call.1
= control target key start
LH: loop header
LB: loop body
LE: loop exit
PB: predicated region body
PF: predicated region fallthrough
CT: control target
= control target key end

     0   :  { %s1843_s0 = inlined_call_operand.hbm [shape: f32[8,128], index: 0, kind: input, shape index: {}]   ;;  %s1844_s1 = inlined_call_operand.hbm [shape: bf16[128,128], index: 1, kind: input, shape index: {}]   ;;  %s1845_s2 = inlined_call_operand.vmem [shape: f32[1,128], index: 2, kind: input, shape index: {}]   ;;  %s1846_s3 = inlined_call_operand.hbm [shape: bf16[128,128], index: 3, kind: input, shape index: {}]   ;;  %s1847_s4 = inlined_call_operand.vmem [shape: f32[1,128], index: 4, kind: input, shape index: {}]   ;;  %s1848_s5 = inlined_call_operand.hbm [shape: bf16[128,128], index: 5, kind: input, shape index: {}]   ;;  %s1849_s6 = inlined_call_operand.vmem [shape: f32[1,128], index: 6, kind: input, shape index: {}]   ;;  %s1850_s7 = inlined_call_operand.hbm [shape: bf16[128,128], index: 7, kind: input, shape index: {}]   ;;  %s1851_s8 = inlined_call_operand.vmem [shape: f32[1,128], index: 8, kind: input, shape index: {}]   ;;  %s1852_s9 = inlined_call_operand.hbm [shape: bf16[128,128], index: 9, kind: input, shape index: {}]   ;;  %s1853_s10 = inlined_call_operand.vmem [shape: f32[1,128], index: 10, kind: input, shape index: {}]   ;;  %s1854_s11 = inlined_call_operand.hbm [shape: bf16[128,128], index: 11, kind: input, shape index: {}]   ;;  %s1855_s12 = inlined_call_operand.vmem [shape: f32[1,128], index: 12, kind: input, shape index: {}]   ;;  %s1856_s13 = inlined_call_operand.hbm [shape: bf16[128,128], index: 13, kind: input, shape index: {}]   ;;  %s1857_s14 = inlined_call_operand.vmem [shape: f32[1,128], index: 14, kind: input, shape index: {}]   ;;  %s1858_s15 = inlined_call_operand.hbm [shape: f32[8,128], index: 15, kind: output, shape index: {}]  }
   0x1   :  { %1860 = sst [smem:[#allocation23_spill]] %s1858_s15 }
   0x2   :  { %20 = vsyncpa [#allocation3], 0 }
   0x3   :  { %21 = vsyncpa [#allocation6], 0 }
   0x4   :  { %22 = vsyncpa [#allocation9], 0 }
   0x5   :  { %23 = vsyncpa [#allocation12], 0 }
   0x6   :  { %24 = vsyncpa [#allocation15], 0 }
   0x7   :  { %25 = vsyncpa [#allocation4], 0  ;;  %s1520_s18 = smov [#allocation5]   ;;  %s1310_s22 = scalar_lea.hbm %s1844_s1, 1024 }
   0x8   :  { %s41_s19 = sshll.u32 %s1520_s18, 4  ;;  %p1311_p0 = scmp.ne.s32.totalorder %s1844_s1, %s1310_s22  ;;  %s42_s19 = int_to_ptr.vmem [resolvable:$true] %s41_s19 }
   0x9   :  { %p1314_p1 = scmp.lt.u32.totalorder %s1310_s22, %s1844_s1 }
   0xb   :  { %p1316_p2 = pnand %p1314_p1, %p1311_p0 }
   0xd   :  { %1319 = shalt.err (!%p1316_p2)
}
   0xe   :  { %s1320_s27 = scalar_lea.vmem %s42_s19, 1024  ;;  %p1325_p4 = scmp.lt.s32.totalorder %s42_s19, %s42_s19 }
   0xf   :  { %p1321_p3 = scmp.ne.s32.totalorder %s42_s19, %s1320_s27  ;;  %p1326_p5 = scmp.lt.s32.totalorder %s1320_s27, %s1320_s27 }
  0x11   :  { %p1327_p6 = por %p1326_p5, %p1325_p4 }
  0x13   :  { %p1328_p7 = pnand %p1327_p6, %p1321_p3 }
  0x15   :  { %1331 = shalt.err (!%p1328_p7)
}
  0x16   :  { %s1521_s28 = smov 64   ;;  %s1522_s29 = smov 4  }
  0x17   :  { %47 = dma.hbm_to_vmem [thread:$0]  %s1844_s1, 1024, %s42_s19, [#allocation6], %s1521_s28, %s1521_s28, %s1522_s29  }
  0x18   :  { %s1523_s17 = smov [#allocation8]   ;;  %s1524_s20 = smov [#allocation11]  }
  0x19   :  { %s69_s18 = sshll.u32 %s1523_s17, 4  ;;  %s97_s21 = sshll.u32 %s1524_s20, 4  ;;  %s70_s18 = int_to_ptr.vmem [resolvable:$true] %s69_s18  ;;  %s98_s21 = int_to_ptr.vmem [resolvable:$true] %s97_s21 }
  0x1a   :  { %s1332_s24 = scalar_lea.hbm %s1848_s5, 1024 }
  0x1b   :  { %p1333_p8 = scmp.ne.s32.totalorder %s1848_s5, %s1332_s24  ;;  %p1336_p9 = scmp.lt.u32.totalorder %s1332_s24, %s1848_s5 }
  0x1d   :  { %p1338_p10 = pnand %p1336_p9, %p1333_p8 }
  0x1f   :  { %1341 = shalt.err (!%p1338_p10)
}
  0x20   :  { %s1342_s1 = scalar_lea.vmem %s70_s18, 1024  ;;  %p1347_p12 = scmp.lt.s32.totalorder %s70_s18, %s70_s18 }
  0x21   :  { %p1343_p11 = scmp.ne.s32.totalorder %s70_s18, %s1342_s1  ;;  %p1348_p13 = scmp.lt.s32.totalorder %s1342_s1, %s1342_s1 }
  0x23   :  { %p1349_p0 = por %p1348_p13, %p1347_p12 }
  0x25   :  { %p1350_p1 = pnand %p1349_p0, %p1343_p11 }
  0x27   :  { %1353 = shalt.err (!%p1350_p1)
}
  0x28   :  { %75 = dma.hbm_to_vmem [thread:$0]  %s1848_s5, 1024, %s70_s18, [#allocation9], %s1521_s28, %s1521_s28, %s1522_s29  }
  0x29   :  { %s1354_s17 = scalar_lea.hbm %s1852_s9, 1024 }
  0x2a   :  { %p1355_p2 = scmp.ne.s32.totalorder %s1852_s9, %s1354_s17  ;;  %p1358_p3 = scmp.lt.u32.totalorder %s1354_s17, %s1852_s9 }
  0x2c   :  { %p1360_p4 = pnand %p1358_p3, %p1355_p2 }
  0x2e   :  { %1363 = shalt.err (!%p1360_p4)
}
  0x2f   :  { %s1364_s25 = scalar_lea.vmem %s98_s21, 1024  ;;  %p1369_p6 = scmp.lt.s32.totalorder %s98_s21, %s98_s21 }
  0x30   :  { %p1365_p5 = scmp.ne.s32.totalorder %s98_s21, %s1364_s25  ;;  %p1370_p7 = scmp.lt.s32.totalorder %s1364_s25, %s1364_s25 }
  0x32   :  { %p1371_p8 = por %p1370_p7, %p1369_p6 }
  0x34   :  { %p1372_p9 = pnand %p1371_p8, %p1365_p5 }
  0x36   :  { %1375 = shalt.err (!%p1372_p9)
}
  0x37   :  { %103 = dma.hbm_to_vmem [thread:$0]  %s1852_s9, 1024, %s98_s21, [#allocation12], %s1521_s28, %s1521_s28, %s1522_s29  }
  0x38   :  { %s1525_s26 = smov [#allocation2]   ;;  %s1526_s1 = smov [#allocation7]  }
  0x39   :  { %s32_s27 = sshll.u32 %s1525_s26, 4  ;;  %s55_s19 = sshll.u32 %s1526_s1, 4  ;;  %s33_s27 = int_to_ptr.vmem [resolvable:$true] %s32_s27  ;;  %s56_s19 = int_to_ptr.vmem [resolvable:$true] %s55_s19 }
  0x3a   :  { %s1376_s15 = scalar_lea.hbm %s1843_s0, 128 }
  0x3b   :  { %p1377_p10 = scmp.ne.s32.totalorder %s1843_s0, %s1376_s15  ;;  %p1380_p11 = scmp.lt.u32.totalorder %s1376_s15, %s1843_s0 }
  0x3d   :  { %p1382_p12 = pnand %p1380_p11, %p1377_p10 }
  0x3f   :  { %1385 = shalt.err (!%p1382_p12)
}
  0x40   :  { %s1386_s9 = scalar_lea.vmem %s33_s27, 128  ;;  %p1391_p0 = scmp.lt.s32.totalorder %s33_s27, %s33_s27 }
  0x41   :  { %p1387_p13 = scmp.ne.s32.totalorder %s33_s27, %s1386_s9  ;;  %p1392_p1 = scmp.lt.s32.totalorder %s1386_s9, %s1386_s9 }
  0x43   :  { %p1393_p2 = por %p1392_p1, %p1391_p0 }
  0x45   :  { %p1394_p3 = pnand %p1393_p2, %p1387_p13 }
  0x47   :  { %1397 = shalt.err (!%p1394_p3)
}
  0x48   :  { %35 = dma.hbm_to_vmem [thread:$0]  %s1843_s0, 128, %s33_s27, [#allocation3]  }
  0x49   :  { %s1398_s18 = scalar_lea.hbm %s1846_s3, 1024 }
  0x4a   :  { %p1399_p4 = scmp.ne.s32.totalorder %s1846_s3, %s1398_s18  ;;  %p1402_p5 = scmp.lt.u32.totalorder %s1398_s18, %s1846_s3 }
  0x4c   :  { %p1404_p6 = pnand %p1402_p5, %p1399_p4 }
  0x4e   :  { %1407 = shalt.err (!%p1404_p6)
}
  0x4f   :  { %s1408_s15 = scalar_lea.vmem %s56_s19, 1024  ;;  %p1413_p8 = scmp.lt.s32.totalorder %s56_s19, %s56_s19 }
  0x50   :  { %p1409_p7 = scmp.ne.s32.totalorder %s56_s19, %s1408_s15  ;;  %p1414_p9 = scmp.lt.s32.totalorder %s1408_s15, %s1408_s15 }
  0x52   :  { %p1415_p10 = por %p1414_p9, %p1413_p8 }
  0x54   :  { %p1416_p11 = pnand %p1415_p10, %p1409_p7 }
  0x56   :  { %1419 = shalt.err (!%p1416_p11)
}
  0x57   :  { %61 = dma.hbm_to_vmem [thread:$0]  %s1846_s3, 1024, %s56_s19, [#allocation6], %s1521_s28, %s1521_s28, %s1522_s29  }
  0x58   :  { %s1527_s17 = smov [#allocation10]   ;;  %s1528_s22 = smov [#allocation13]  }
  0x59   :  { %s83_s20 = sshll.u32 %s1527_s17, 4  ;;  %s111_s23 = sshll.u32 %s1528_s22, 4  ;;  %s84_s20 = int_to_ptr.vmem [resolvable:$true] %s83_s20  ;;  %s112_s23 = int_to_ptr.vmem [resolvable:$true] %s111_s23 }
  0x5a   :  { %s1420_s24 = scalar_lea.hbm %s1850_s7, 1024 }
  0x5b   :  { %p1421_p12 = scmp.ne.s32.totalorder %s1850_s7, %s1420_s24  ;;  %p1424_p13 = scmp.lt.u32.totalorder %s1420_s24, %s1850_s7 }
  0x5d   :  { %p1426_p0 = pnand %p1424_p13, %p1421_p12 }
  0x5f   :  { %1429 = shalt.err (!%p1426_p0)
}
  0x60   :  { %s1430_s3 = scalar_lea.vmem %s84_s20, 1024  ;;  %p1435_p2 = scmp.lt.s32.totalorder %s84_s20, %s84_s20 }
  0x61   :  { %p1431_p1 = scmp.ne.s32.totalorder %s84_s20, %s1430_s3  ;;  %p1436_p3 = scmp.lt.s32.totalorder %s1430_s3, %s1430_s3 }
  0x63   :  { %p1437_p4 = por %p1436_p3, %p1435_p2 }
  0x65   :  { %p1438_p5 = pnand %p1437_p4, %p1431_p1 }
  0x67   :  { %1441 = shalt.err (!%p1438_p5)
}
  0x68   :  { %89 = dma.hbm_to_vmem [thread:$0]  %s1850_s7, 1024, %s84_s20, [#allocation9], %s1521_s28, %s1521_s28, %s1522_s29  }
  0x69   :  { %s1442_s15 = scalar_lea.hbm %s1854_s11, 1024 }
  0x6a   :  { %p1443_p6 = scmp.ne.s32.totalorder %s1854_s11, %s1442_s15  ;;  %p1446_p7 = scmp.lt.u32.totalorder %s1442_s15, %s1854_s11 }
  0x6c   :  { %p1448_p8 = pnand %p1446_p7, %p1443_p6 }
  0x6e   :  { %1451 = shalt.err (!%p1448_p8)
}
  0x6f   :  { %s1452_s9 = scalar_lea.vmem %s112_s23, 1024  ;;  %p1457_p10 = scmp.lt.s32.totalorder %s112_s23, %s112_s23 }
  0x70   :  { %p1453_p9 = scmp.ne.s32.totalorder %s112_s23, %s1452_s9  ;;  %p1458_p11 = scmp.lt.s32.totalorder %s1452_s9, %s1452_s9 }
  0x72   :  { %p1459_p12 = por %p1458_p11, %p1457_p10 }
  0x74   :  { %p1460_p13 = pnand %p1459_p12, %p1453_p9 }
  0x76   :  { %1463 = shalt.err (!%p1460_p13)
}
  0x77   :  { %117 = dma.hbm_to_vmem [thread:$0]  %s1854_s11, 1024, %s112_s23, [#allocation12], %s1521_s28, %s1521_s28, %s1522_s29  }
  0x78   :  { %s1529_s21 = smov [#allocation14]   ;;  %s1464_s18 = scalar_lea.hbm %s1856_s13, 1024 }
  0x79   :  { %s125_s24 = sshll.u32 %s1529_s21, 4  ;;  %p1465_p0 = scmp.ne.s32.totalorder %s1856_s13, %s1464_s18  ;;  %s126_s24 = int_to_ptr.vmem [resolvable:$true] %s125_s24 }
  0x7a   :  { %p1468_p1 = scmp.lt.u32.totalorder %s1464_s18, %s1856_s13 }
  0x7c   :  { %p1470_p2 = pnand %p1468_p1, %p1465_p0 }
  0x7e   :  { %1473 = shalt.err (!%p1470_p2)
}
  0x7f   :  { %s1474_s30 = scalar_lea.vmem %s126_s24, 1024  ;;  %p1479_p4 = scmp.lt.s32.totalorder %s126_s24, %s126_s24 }
  0x80   :  { %p1475_p3 = scmp.ne.s32.totalorder %s126_s24, %s1474_s30  ;;  %p1480_p5 = scmp.lt.s32.totalorder %s1474_s30, %s1474_s30 }
  0x82   :  { %p1481_p6 = por %p1480_p5, %p1479_p4 }
  0x84   :  { %p1482_p7 = pnand %p1481_p6, %p1475_p3 }
  0x86   :  { %1485 = shalt.err (!%p1482_p7)
}
  0x87   :  { %131 = dma.hbm_to_vmem [thread:$0]  %s1856_s13, 1024, %s126_s24, [#allocation15], %s1521_s28, %s1521_s28, %s1522_s29  }
  0x88   :  { %1508 = dma.done.wait [#allocation3], 128  }
  0x89   :  { %1509 = vsyncadd [#allocation3], 4294967168 }
  0x8a   :  { %1510 = dma.done.wait [#allocation6], 2048  }
  0x8b   :  { %1511 = vsyncadd [#allocation6], 4294965248 }
  0x8c   :  { %1512 = dma.done.wait [#allocation9], 2048  }
  0x8d   :  { %1513 = vsyncadd [#allocation9], 4294965248 }
  0x8e   :  { %1514 = dma.done.wait [#allocation12], 2048  }
  0x8f   :  { %1515 = vsyncadd [#allocation12], 4294965248 }
  0x90   :  { %1516 = dma.done.wait [#allocation15], 1024  }
  0x91   :  { %1517 = vsyncadd [#allocation15], 4294966272  ;;  %v1530_v0 = vmov 0.0   ;;  %vm1531_vm0 = vmmov 0   ;;  %v1254_v1 = vld [vmem:[#allocation5] sm:$0xff]   ;;  %v1255_v2 = vld [vmem:[#allocation5 + $0x8] sm:$0xff]  }
  0x92   :  { %1095 = vmatprep.subr.bf16.mxu0 %v1530_v0  ;;  %1111 = vmatprep.mubr.msk.bf16.mxu0 %vm1531_vm0, %v1530_v0  ;;  %v1256_v3 = vld [vmem:[#allocation5 + $0x10] sm:$0xff]   ;;  %v1262_v4 = vld [vmem:[#allocation7] sm:$0xff]   ;;  %v1257_v5 = vld [vmem:[#allocation5 + $0x18] sm:$0xff]   ;;  %s1532_s9 = smov [#allocation16]  }
  0x93   :  { %1115 = vmatprep.subr.bf16.mxu1 %v1530_v0  ;;  %1131 = vmatprep.mubr.msk.bf16.mxu1 %vm1531_vm0, %v1530_v0  ;;  %v1263_v6 = vld [vmem:[#allocation7 + $0x8] sm:$0xff]   ;;  %v1258_v7 = vld [vmem:[#allocation5 + $0x20] sm:$0xff]   ;;  %v1264_v8 = vld [vmem:[#allocation7 + $0x10] sm:$0xff]   ;;  %s956_s7 = sshll.u32 %s1532_s9, 4  ;;  %s957_s7 = int_to_ptr.vmem [resolvable:$true] %s956_s7 }
  0x94   :  { %1096 = vmatpush3.bf16.msra.mxu0 %v1254_v1  ;;  %1116 = vmatpush3.bf16.msra.mxu1 %v1262_v4  ;;  %v1259_v9 = vld [vmem:[#allocation5 + $0x28] sm:$0xff]   ;;  %v1265_v10 = vld [vmem:[#allocation7 + $0x18] sm:$0xff]   ;;  %v1260_v11 = vld [vmem:[#allocation5 + $0x30] sm:$0xff]   ;;  %s1486_s20 = scalar_lea.vmem %s957_s7, 128  ;;  %p1491_p9 = scmp.lt.s32.totalorder %s957_s7, %s957_s7 }
  0x95   :  { %1097 = vmatprep.subr.bf16.mxu0 %v1530_v0  ;;  %1117 = vmatprep.subr.bf16.mxu1 %v1530_v0  ;;  %v1266_v12 = vld [vmem:[#allocation7 + $0x20] sm:$0xff]   ;;  %v1261_v13 = vld [vmem:[#allocation5 + $0x38] sm:$0xff]   ;;  %v1267_v15 = vld [vmem:[#allocation7 + $0x28] sm:$0xff]   ;;  %p1487_p8 = scmp.ne.s32.totalorder %s957_s7, %s1486_s20  ;;  %p1492_p10 = scmp.lt.s32.totalorder %s1486_s20, %s1486_s20 }
  0x96   :  { %v1745_v14 = vld [vmem:[#allocation2] sm:$0xff]  ;;  %v1268_v17 = vld [vmem:[#allocation7 + $0x30] sm:$0xff]   ;;  %v1270_v19 = vld [vmem:[#allocation8] sm:$0xff]  }
  0x97   :  { %v160_v16 = vpack.c.bf16 %v1745_v14, %v1745_v14  ;;  %v1269_v18 = vld [vmem:[#allocation7 + $0x38] sm:$0xff]   ;;  %v1271_v20 = vld [vmem:[#allocation8 + $0x8] sm:$0xff]   ;;  %v1272_v21 = vld [vmem:[#allocation8 + $0x10] sm:$0xff]   ;;  %p1493_p11 = por %p1492_p10, %p1491_p9 }
  0x98   :  { %1098 = vmatpush3.bf16.msra.mxu0 %v1255_v2  ;;  %1118 = vmatpush3.bf16.msra.mxu1 %v1263_v6  ;;  %v1273_v22 = vld [vmem:[#allocation8 + $0x18] sm:$0xff]   ;;  %v1274_v23 = vld [vmem:[#allocation8 + $0x20] sm:$0xff]   ;;  %v1275_v24 = vld [vmem:[#allocation8 + $0x28] sm:$0xff]  }
  0x99   :  { %1099 = vmatprep.subr.bf16.mxu0 %v1530_v0  ;;  %1119 = vmatprep.subr.bf16.mxu1 %v1530_v0  ;;  %v969_v25 = vld [vmem:[%s1845_s2] ss:$0 sm:$0xff]  ;;  %v1276_v33 = vld [vmem:[#allocation8 + $0x30] sm:$0xff]   ;;  %v1278_v35 = vld [vmem:[#allocation10] sm:$0xff]   ;;  %p1494_p12 = pnand %p1493_p11, %p1487_p8 }
  0x9a   :  { %v1277_v34 = vld [vmem:[#allocation8 + $0x38] sm:$0xff]   ;;  %v1279_v36 = vld [vmem:[#allocation10 + $0x8] sm:$0xff]   ;;  %v1280_v37 = vld [vmem:[#allocation10 + $0x10] sm:$0xff]  }
  0x9b   :  { %v1281_v38 = vld [vmem:[#allocation10 + $0x18] sm:$0xff]   ;;  %v1282_v39 = vld [vmem:[#allocation10 + $0x20] sm:$0xff]   ;;  %v1283_v40 = vld [vmem:[#allocation10 + $0x28] sm:$0xff]  }
  0x9c   :  { %1100 = vmatpush3.bf16.msra.mxu0 %v1256_v3  ;;  %1120 = vmatpush3.bf16.msra.mxu1 %v1264_v8  ;;  %v978_v41 = vld [vmem:[%s1847_s4] ss:$0 sm:$0xff]  ;;  %v1284_v49 = vld [vmem:[#allocation10 + $0x30] sm:$0xff]   ;;  %v1286_v51 = vld [vmem:[#allocation11] sm:$0xff]  }
  0x9d   :  { %1101 = vmatprep.subr.bf16.mxu0 %v1530_v0  ;;  %1121 = vmatprep.subr.bf16.mxu1 %v1530_v0  ;;  %v1285_v50 = vld [vmem:[#allocation10 + $0x38] sm:$0xff]   ;;  %v1287_v52 = vld [vmem:[#allocation11 + $0x8] sm:$0xff]   ;;  %v1288_v53 = vld [vmem:[#allocation11 + $0x10] sm:$0xff]  }
  0x9e   :  { %v1289_v54 = vld [vmem:[#allocation11 + $0x18] sm:$0xff]   ;;  %v1290_v55 = vld [vmem:[#allocation11 + $0x20] sm:$0xff]   ;;  %v1291_v56 = vld [vmem:[#allocation11 + $0x28] sm:$0xff]  }
  0x9f   :  { %v987_v57 = vld [vmem:[%s1849_s6] ss:$0 sm:$0xff]  ;;  %v1292_v2 = vld [vmem:[#allocation11 + $0x30] sm:$0xff]   ;;  %v1294_v4 = vld [vmem:[#allocation13] sm:$0xff]  }
  0xa0   :  { %1102 = vmatpush3.bf16.msra.mxu0 %v1257_v5  ;;  %1122 = vmatpush3.bf16.msra.mxu1 %v1265_v10  ;;  %v1293_v3 = vld [vmem:[#allocation11 + $0x38] sm:$0xff]   ;;  %v1295_v5 = vld [vmem:[#allocation13 + $0x8] sm:$0xff]   ;;  %v1296_v6 = vld [vmem:[#allocation13 + $0x10] sm:$0xff]  }
  0xa1   :  { %1103 = vmatprep.subr.bf16.mxu0 %v1530_v0  ;;  %1123 = vmatprep.subr.bf16.mxu1 %v1530_v0  ;;  %v1298_v8 = vld [vmem:[#allocation13 + $0x20] sm:$0xff]   ;;  %v1300_v10 = vld [vmem:[#allocation13 + $0x30] sm:$0xff]  }
  0xa4   :  { %1104 = vmatpush3.bf16.msra.mxu0 %v1258_v7  ;;  %1124 = vmatpush3.bf16.msra.mxu1 %v1266_v12  ;;  %v1297_v7 = vld [vmem:[#allocation13 + $0x18] sm:$0xff]  }
  0xa5   :  { %1105 = vmatprep.subr.bf16.mxu0 %v1530_v0  ;;  %1125 = vmatprep.subr.bf16.mxu1 %v1530_v0 }
  0xa8   :  { %1106 = vmatpush3.bf16.msra.mxu0 %v1259_v9  ;;  %1126 = vmatpush3.bf16.msra.mxu1 %v1267_v15  ;;  %v1299_v9 = vld [vmem:[#allocation13 + $0x28] sm:$0xff]  }
  0xa9   :  { %1107 = vmatprep.subr.bf16.mxu0 %v1530_v0  ;;  %1127 = vmatprep.subr.bf16.mxu1 %v1530_v0 }
  0xac   :  { %1108 = vmatpush3.bf16.msra.mxu0 %v1260_v11  ;;  %1128 = vmatpush3.bf16.msra.mxu1 %v1268_v17  ;;  %v996_v11 = vld [vmem:[%s1851_s8] ss:$0 sm:$0xff] }
  0xad   :  { %1109 = vmatprep.subr.bf16.mxu0 %v1530_v0  ;;  %1129 = vmatprep.subr.bf16.mxu1 %v1530_v0 }
  0xb0   :  { %1110 = vmatpush3.bf16.msra.mxu0 %v1261_v13  ;;  %1130 = vmatpush3.bf16.msra.mxu1 %v1269_v18 }
  0xb1   :  { %1135 = vmatprep.subr.bf16.mxu0 %v1530_v0  ;;  %1155 = vmatprep.subr.bf16.mxu1 %v1530_v0 }
  0xb3   :  { %1112 = vmatmul.mubr.bf16.vlgmr.msra.gmra.mrb[0].mxu0 %v160_v16 }
  0xb4   :  { %1151 = vmatprep.mubr.msk.bf16.mxu0 %vm1531_vm0, %v1530_v0  ;;  %1136 = vmatpush3.bf16.msra.mxu0 %v1270_v19  ;;  %v1301_v19 = vld [vmem:[#allocation13 + $0x38] sm:$0xff]  }
  0xb5   :  { %1137 = vmatprep.subr.bf16.mxu0 %v1530_v0 }
  0xb8   :  { %1138 = vmatpush3.bf16.msra.mxu0 %v1271_v20  ;;  %v1005_v20 = vld [vmem:[%s1853_s10] ss:$0 sm:$0xff] }
  0xb9   :  { %1139 = vmatprep.subr.bf16.mxu0 %v1530_v0 }
  0xbc   :  { %1140 = vmatpush3.bf16.msra.mxu0 %v1272_v21 }
  0xbd   :  { %1141 = vmatprep.subr.bf16.mxu0 %v1530_v0 }
  0xc0   :  { %1142 = vmatpush3.bf16.msra.mxu0 %v1273_v22 }
  0xc1   :  { %1143 = vmatprep.subr.bf16.mxu0 %v1530_v0 }
  0xc4   :  { %1144 = vmatpush3.bf16.msra.mxu0 %v1274_v23 }
  0xc5   :  { %1145 = vmatprep.subr.bf16.mxu0 %v1530_v0 }
  0xc8   :  { %1146 = vmatpush3.bf16.msra.mxu0 %v1275_v24 }
  0xc9   :  { %1147 = vmatprep.subr.bf16.mxu0 %v1530_v0 }
  0xcc   :  { %1148 = vmatpush3.bf16.msra.mxu0 %v1276_v33  ;;  %v1307_v33 = vld [vmem:[#allocation14 + $0x28] sm:$0xff]  }
  0xcd   :  { %1149 = vmatprep.subr.bf16.mxu0 %v1530_v0 }
  0xd0   :  { %1150 = vmatpush3.bf16.msra.mxu0 %v1277_v34  ;;  %v1308_v34 = vld [vmem:[#allocation14 + $0x30] sm:$0xff]  }
  0xd1   :  { %1175 = vmatprep.subr.bf16.mxu0 %v1530_v0 }
 0x186   :  { %v283_v26 = vpop.f32.mrb[0].mxu0 }
 0x187   :  { %v284_v27 = vadd.f32 %v969_v25, %v283_v26  ;;  %v1113_v28 = vpop.f32.mrb[1].mxu0 }
 0x188   :  { %v286_v29 = vpop.f32.mrb[2].mxu0 }
 0x189   :  { %v289_v30 = vmax.f32 %v284_v27, 0.0  ;;  %v1114_v31 = vpop.f32.mrb[3].mxu0  ;;  %v1302_v27 = vld [vmem:[#allocation14] sm:$0xff]   ;;  %v1303_v29 = vld [vmem:[#allocation14 + $0x8] sm:$0xff]  }
 0x18a   :  { %v1305_v31 = vld [vmem:[#allocation14 + $0x18] sm:$0xff]  }
 0x18b   :  { %v290_v32 = vpack.c.bf16 %v289_v30, %v289_v30  ;;  %v1304_v30 = vld [vmem:[#allocation14 + $0x10] sm:$0xff]  }
 0x18d   :  { %1132 = vmatmul.mubr.bf16.vlgmr.msra.gmra.mrb[0].mxu1 %v290_v32  ;;  %v1306_v32 = vld [vmem:[#allocation14 + $0x20] sm:$0xff]  }
 0x18e   :  { %1171 = vmatprep.mubr.msk.bf16.mxu1 %vm1531_vm0, %v1530_v0  ;;  %1156 = vmatpush3.bf16.msra.mxu1 %v1278_v35  ;;  %v1309_v35 = vld [vmem:[#allocation14 + $0x38] sm:$0xff]  }
 0x18f   :  { %1157 = vmatprep.subr.bf16.mxu1 %v1530_v0 }
 0x192   :  { %1158 = vmatpush3.bf16.msra.mxu1 %v1279_v36  ;;  %v1014_v36 = vld [vmem:[%s1855_s12] ss:$0 sm:$0xff] }
 0x193   :  { %1159 = vmatprep.subr.bf16.mxu1 %v1530_v0 }
 0x196   :  { %1160 = vmatpush3.bf16.msra.mxu1 %v1280_v37  ;;  %v1023_v37 = vld [vmem:[%s1857_s14] ss:$0 sm:$0xff] }
 0x197   :  { %1161 = vmatprep.subr.bf16.mxu1 %v1530_v0 }
 0x19a   :  { %1162 = vmatpush3.bf16.msra.mxu1 %v1281_v38  ;;  %v1235_v38 = vadd.f32 %v1023_v37, %v1014_v36 }
 0x19b   :  { %1163 = vmatprep.subr.bf16.mxu1 %v1530_v0 }
 0x19e   :  { %1164 = vmatpush3.bf16.msra.mxu1 %v1282_v39 }
 0x19f   :  { %1165 = vmatprep.subr.bf16.mxu1 %v1530_v0 }
 0x1a2   :  { %1166 = vmatpush3.bf16.msra.mxu1 %v1283_v40 }
 0x1a3   :  { %1167 = vmatprep.subr.bf16.mxu1 %v1530_v0 }
 0x1a6   :  { %1168 = vmatpush3.bf16.msra.mxu1 %v1284_v49 }
 0x1a7   :  { %1169 = vmatprep.subr.bf16.mxu1 %v1530_v0 }
 0x1aa   :  { %1170 = vmatpush3.bf16.msra.mxu1 %v1285_v50 }
 0x1ab   :  { %1195 = vmatprep.subr.bf16.mxu1 %v1530_v0 }
 0x260   :  { %v379_v42 = vpop.f32.mrb[0].mxu1 }
 0x261   :  { %v380_v43 = vadd.f32 %v978_v41, %v379_v42  ;;  %v1133_v44 = vpop.f32.mrb[1].mxu1 }
 0x262   :  { %v382_v45 = vpop.f32.mrb[2].mxu1 }
 0x263   :  { %v1781_v46 = vadd.f32 %v380_v43, %v1745_v14  ;;  %v1134_v47 = vpop.f32.mrb[3].mxu1 }
 0x265   :  { %v386_v48 = vpack.c.bf16 %v1781_v46, %v1781_v46 }
 0x267   :  { %1152 = vmatmul.mubr.bf16.vlgmr.msra.gmra.mrb[4].mxu0 %v386_v48 }
 0x268   :  { %1191 = vmatprep.mubr.msk.bf16.mxu0 %vm1531_vm0, %v1530_v0  ;;  %1176 = vmatpush3.bf16.msra.mxu0 %v1286_v51 }
 0x269   :  { %1177 = vmatprep.subr.bf16.mxu0 %v1530_v0 }
 0x26c   :  { %1178 = vmatpush3.bf16.msra.mxu0 %v1287_v52 }
 0x26d   :  { %1179 = vmatprep.subr.bf16.mxu0 %v1530_v0 }
 0x270   :  { %1180 = vmatpush3.bf16.msra.mxu0 %v1288_v53 }
 0x271   :  { %1181 = vmatprep.subr.bf16.mxu0 %v1530_v0 }
 0x274   :  { %1182 = vmatpush3.bf16.msra.mxu0 %v1289_v54 }
 0x275   :  { %1183 = vmatprep.subr.bf16.mxu0 %v1530_v0 }
 0x278   :  { %1184 = vmatpush3.bf16.msra.mxu0 %v1290_v55 }
 0x279   :  { %1185 = vmatprep.subr.bf16.mxu0 %v1530_v0 }
 0x27c   :  { %1186 = vmatpush3.bf16.msra.mxu0 %v1291_v56 }
 0x27d   :  { %1187 = vmatprep.subr.bf16.mxu0 %v1530_v0 }
 0x280   :  { %1188 = vmatpush3.bf16.msra.mxu0 %v1292_v2 }
 0x281   :  { %1189 = vmatprep.subr.bf16.mxu0 %v1530_v0 }
 0x284   :  { %1190 = vmatpush3.bf16.msra.mxu0 %v1293_v3 }
 0x33a   :  { %v509_v58 = vpop.f32.mrb[4].mxu0 }
 0x33b   :  { %v510_v59 = vadd.f32 %v987_v57, %v509_v58  ;;  %v1153_v60 = vpop.f32.mrb[5].mxu0 }
 0x33c   :  { %v512_v61 = vpop.f32.mrb[6].mxu0 }
 0x33d   :  { %v515_v62 = vmax.f32 %v510_v59, 0.0  ;;  %v1154_v63 = vpop.f32.mrb[7].mxu0 }
 0x33f   :  { %v516_v1 = vpack.c.bf16 %v515_v62, %v515_v62 }
 0x341   :  { %1172 = vmatmul.mubr.bf16.vlgmr.msra.gmra.mrb[4].mxu1 %v516_v1 }
 0x342   :  { %1211 = vmatprep.mubr.msk.bf16.mxu1 %vm1531_vm0, %v1530_v0  ;;  %1196 = vmatpush3.bf16.msra.mxu1 %v1294_v4 }
 0x343   :  { %1197 = vmatprep.subr.bf16.mxu1 %v1530_v0 }
 0x346   :  { %1198 = vmatpush3.bf16.msra.mxu1 %v1295_v5 }
 0x347   :  { %1199 = vmatprep.subr.bf16.mxu1 %v1530_v0 }
 0x34a   :  { %1200 = vmatpush3.bf16.msra.mxu1 %v1296_v6 }
 0x34b   :  { %1201 = vmatprep.subr.bf16.mxu1 %v1530_v0 }
 0x34e   :  { %1202 = vmatpush3.bf16.msra.mxu1 %v1297_v7 }
 0x34f   :  { %1203 = vmatprep.subr.bf16.mxu1 %v1530_v0 }
 0x352   :  { %1204 = vmatpush3.bf16.msra.mxu1 %v1298_v8 }
 0x353   :  { %1205 = vmatprep.subr.bf16.mxu1 %v1530_v0 }
 0x356   :  { %1206 = vmatpush3.bf16.msra.mxu1 %v1299_v9 }
 0x357   :  { %1207 = vmatprep.subr.bf16.mxu1 %v1530_v0 }
 0x35a   :  { %1208 = vmatpush3.bf16.msra.mxu1 %v1300_v10 }
 0x35b   :  { %1209 = vmatprep.subr.bf16.mxu1 %v1530_v0 }
 0x35e   :  { %1210 = vmatpush3.bf16.msra.mxu1 %v1301_v19 }
 0x35f   :  { %1215 = vmatprep.subr.bf16.mxu1 %v1530_v0 }
 0x414   :  { %v605_v12 = vpop.f32.mrb[4].mxu1 }
 0x415   :  { %v606_v13 = vadd.f32 %v996_v11, %v605_v12  ;;  %v1173_v14 = vpop.f32.mrb[5].mxu1 }
 0x416   :  { %v608_v15 = vpop.f32.mrb[6].mxu1 }
 0x417   :  { %v611_v16 = vadd.f32 %v606_v13, %v1781_v46  ;;  %v1174_v17 = vpop.f32.mrb[7].mxu1 }
 0x419   :  { %v612_v18 = vpack.c.bf16 %v611_v16, %v611_v16 }
 0x41b   :  { %1192 = vmatmul.mubr.bf16.vlgmr.msra.gmra.mrb[8].mxu0 %v612_v18 }
 0x4ee   :  { %v735_v21 = vpop.f32.mrb[8].mxu0 }
 0x4ef   :  { %v736_v22 = vadd.f32 %v1005_v20, %v735_v21  ;;  %v1193_v23 = vpop.f32.mrb[9].mxu0 }
 0x4f0   :  { %v738_v24 = vpop.f32.mrb[10].mxu0 }
 0x4f1   :  { %v741_v25 = vmax.f32 %v736_v22, 0.0  ;;  %v1194_v26 = vpop.f32.mrb[11].mxu0 }
 0x4f3   :  { %v742_v28 = vpack.c.bf16 %v741_v25, %v741_v25 }
 0x4f5   :  { %1212 = vmatmul.mubr.bf16.vlgmr.msra.gmra.mrb[8].mxu1 %v742_v28 }
 0x4f6   :  { %1216 = vmatpush3.bf16.msra.mxu1 %v1302_v27  ;;  %1231 = vmatprep.mubr.msk.bf16.mxu1 %vm1531_vm0, %v1530_v0 }
 0x4f7   :  { %1217 = vmatprep.subr.bf16.mxu1 %v1530_v0 }
 0x4fa   :  { %1218 = vmatpush3.bf16.msra.mxu1 %v1303_v29 }
 0x4fb   :  { %1219 = vmatprep.subr.bf16.mxu1 %v1530_v0 }
 0x4fe   :  { %1220 = vmatpush3.bf16.msra.mxu1 %v1304_v30 }
 0x4ff   :  { %1221 = vmatprep.subr.bf16.mxu1 %v1530_v0 }
 0x502   :  { %1222 = vmatpush3.bf16.msra.mxu1 %v1305_v31 }
 0x503   :  { %1223 = vmatprep.subr.bf16.mxu1 %v1530_v0 }
 0x506   :  { %1224 = vmatpush3.bf16.msra.mxu1 %v1306_v32 }
 0x507   :  { %1225 = vmatprep.subr.bf16.mxu1 %v1530_v0 }
 0x50a   :  { %1226 = vmatpush3.bf16.msra.mxu1 %v1307_v33 }
 0x50b   :  { %1227 = vmatprep.subr.bf16.mxu1 %v1530_v0 }
 0x50e   :  { %1228 = vmatpush3.bf16.msra.mxu1 %v1308_v34 }
 0x50f   :  { %1229 = vmatprep.subr.bf16.mxu1 %v1530_v0 }
 0x512   :  { %1230 = vmatpush3.bf16.msra.mxu1 %v1309_v35 }
 0x515   :  { %1232 = vmatmul.mubr.bf16.vlgmr.msra.gmra.mrb[8].mxu1 %v612_v18 }
 0x5e8   :  { %v942_v39 = vpop.f32.mrb[8].mxu1 }
 0x5e9   :  { %v1236_v40 = vadd.f32 %v1235_v38, %v942_v39  ;;  %v1233_v41 = vpop.f32.mrb[9].mxu1 }
 0x5ea   :  { %v945_v42 = vpop.f32.mrb[10].mxu1 }
 0x5eb   :  { %949 = vst [vmem:[#allocation16] sm:$0xff] %v1236_v40  ;;  %v1234_v0 = vpop.f32.mrb[11].mxu1 }
 0x5ec   :  { %1497 = shalt.err (!%p1494_p12)
}
 0x5ed   :  { %s1861_s14 = sld [smem:[#allocation23_spill]] }
 0x5f3   :  { %s1498_s24 = scalar_lea.hbm %s1861_s14, 128 }
 0x5f4   :  { %p1499_p13 = scmp.ne.s32.totalorder %s1861_s14, %s1498_s24  ;;  %p1502_p0 = scmp.lt.u32.totalorder %s1498_s24, %s1861_s14 }
 0x5f6   :  { %p1504_p1 = pnand %p1502_p0, %p1499_p13 }
 0x5f8   :  { %1507 = shalt.err (!%p1504_p1)
}
 0x5f9   :  { %959 = dma.vmem_to_hbm [thread:$0]  %s957_s7, 128, %s1861_s14, [#allocation4]  }
 0x5fa   :  { %1518 = dma.done.wait [#allocation4], 128  }
 0x5fb   :  { %1519 = vsyncadd [#allocation4], 4294967168 }
 0x5fc   :  { %963 = vsyncpa [#allocation3], 1 }
 0x5fd   :  { %964 = vsyncpa [#allocation6], 1 }
 0x5fe   :  { %965 = vsyncpa [#allocation9], 1 }
 0x5ff   :  { %966 = vsyncpa [#allocation12], 1 }
 0x600   :  { %967 = vsyncpa [#allocation15], 1 }
 0x601   :  { %968 = vsyncpa [#allocation4], 1 }

</bundles_post_ra>
